<compile_context>
chip_gen: v5e
topology: v5e:2x2
jax: 0.10.0
libtpu: 0.0.40
codegen_flags: <defaults>
</compile_context>

<pallas_src>
import jax
import jax.numpy as jnp
from jax.experimental import pallas as pl
from jax.experimental.pallas import tpu as pltpu


def _make_kernel(S, ts, has_tail):
    """Builds the kernel with static S / TS / tail-handling baked in."""

    def kernel(emb_ref, mask_ref, w_ref, invc_ref, out_ref, acc_ref):
        # emb_ref : (TB, TS, D)  token-embedding tile (native dtype, e.g. bf16)
        # mask_ref: (TB, 1, TS)  attention-mask tile (native dtype, lane-dense)
        # w_ref   : (1, 1, D)    classifier weight (f32)
        # invc_ref: (TB, 1, 1)   precomputed 1 / clamp(sum(mask), 1e-9) (f32)
        # out_ref : (TB, 1)      logits (bias added outside the kernel)
        # acc_ref : (TB, 1, D)   f32 VMEM accumulator, resident across S axis
        si = pl.program_id(1)
        n_s = pl.num_programs(1)

        @pl.when(si == 0)
        def _init():
            acc_ref[...] = jnp.zeros_like(acc_ref)

        def _accumulate(emb, m):
            # Batched matvec on the MXU: mul + S-reduction leave the VPU/XLU
            # entirely; emb streams in native dtype, accumulation is f32.
            acc_ref[...] += jnp.einsum(
                'bqs,bsd->bqd', m, emb, preferred_element_type=jnp.float32)

        if has_tail:
            is_tail = si == n_s - 1

            @pl.when(jnp.logical_not(is_tail))
            def _acc_full():
                _accumulate(emb_ref[...], mask_ref[...].astype(emb_ref.dtype))

            @pl.when(is_tail)
            def _acc_tail():
                # Rows >= S of the final block are DMA padding (unspecified
                # bits, possibly NaN/Inf): zero BOTH operands before the MXU.
                # Only this single partial tile pays the per-element select.
                base = si * ts
                s_lane = jax.lax.broadcasted_iota(jnp.int32, (1, 1, ts), 2)
                s_sub = jax.lax.broadcasted_iota(jnp.int32, (1, ts, 1), 1)
                m = mask_ref[...].astype(emb_ref.dtype)
                m = jnp.where(base + s_lane < S, m, jnp.zeros_like(m))
                emb = emb_ref[...]
                emb = jnp.where(base + s_sub < S, emb, jnp.zeros_like(emb))
                _accumulate(emb, m)
        else:
            _accumulate(emb_ref[...], mask_ref[...].astype(emb_ref.dtype))

        @pl.when(si == n_s - 1)
        def _finalize():
            # masked mean: multiply by precomputed reciprocal (~1 ulp vs divide)
            pooled = acc_ref[...] * invc_ref[...]               # (TB, 1, D) f32
            # Linear(D, 1): VPU mul + lane reduce; no N=1 MXU push.
            out_ref[...] = jnp.sum(pooled * w_ref[...], axis=-1)  # (TB, 1)

    return kernel


def _device_budgets():
    """Generation-aware (emb tile target bytes, vmem_limit_bytes)."""
    try:
        vmem = pltpu.get_tpu_info().vmem_capacity_bytes
    except Exception:
        vmem = None
    if vmem is None:
        return 4 << 20, 32 << 20            # conservative fallback
    if vmem >= (100 << 20):                 # v5e / v6e: 128 MiB VMEM
        return 12 << 20, 80 << 20
    return 6 << 20, 40 << 20                # v7x: 64 MiB VMEM per TensorCore


def _pick_tiles(B, S, D, itemsize, target_tile_bytes):
    """Pick (TB, TS). TB is a multiple of 8 (or full B); TS is either full S
    or a 128-aligned value sized so the double-buffered emb tile fits the
    generation-specific budget (tails handled in-kernel, no divisibility
    requirement on S)."""
    tb = 8 if (B % 8 == 0 and B >= 8) else B
    row_bytes = max(tb * D * itemsize, 1)
    ts_budget = (target_tile_bytes // row_bytes) // 128 * 128
    if ts_budget >= S or S <= 128:
        return tb, S                        # single S step, full-dim block
    if ts_budget < 128:
        # Enormous D: fall back to the minimal 128-aligned tile.
        return tb, 128
    return tb, int(ts_budget)


def finetuning_wrapper_forward(token_embeddings, attention_mask, w, b,
                               *, tile_b=None, tile_s=None):
    """Fused masked-mean pooling + Linear(D, 1) classifier. Returns (B,) logits."""
    B, S, D = token_embeddings.shape
    itemsize = jnp.dtype(token_embeddings.dtype).itemsize
    target_tile_bytes, vmem_limit = _device_budgets()
    tb, ts = _pick_tiles(B, S, D, itemsize, target_tile_bytes)
    if tile_b is not None:
        tb = tile_b
    if tile_s is not None:
        ts = tile_s
    assert B % tb == 0, "tile_b must divide B (use a multiple of 8 or B itself)"

    grid_s = pl.cdiv(S, ts)
    has_tail = (S % ts) != 0
    # NOTE(megacore): grid[0] = B // tb is the "parallel" axis; when B >= 16
    # (tb = 8) it is >= 2 so both v7x TensorCores engage.
    grid = (B // tb, grid_s)

    # Lane-dense mask layout (B, 1, S): per-tile block is (tb, 1, ts)
    # (~tb*8*ts bytes) instead of the 128x lane-padded (tb, ts, 1).
    mask3 = attention_mask.reshape(B, 1, S)            # native dtype; cast per-tile
    counts = jnp.maximum(
        jnp.sum(attention_mask.astype(jnp.float32), axis=-1), 1e-9)   # (B,) SBERT clamp
    inv_counts = (1.0 / counts).reshape(B, 1, 1).astype(jnp.float32)
    w32 = w.astype(jnp.float32).reshape(1, 1, D)

    out = pl.pallas_call(
        _make_kernel(S, ts, has_tail),
        out_shape=jax.ShapeDtypeStruct((B, 1), jnp.float32),
        grid_spec=pltpu.PrefetchScalarGridSpec(
            num_scalar_prefetch=0,
            grid=grid,
            in_specs=[
                pl.BlockSpec((tb, ts, D), lambda bi, si: (bi, si, 0)),   # emb
                pl.BlockSpec((tb, 1, ts), lambda bi, si: (bi, 0, si)),   # mask
                pl.BlockSpec((1, 1, D), lambda bi, si: (0, 0, 0)),       # weight
                pl.BlockSpec((tb, 1, 1), lambda bi, si: (bi, 0, 0)),     # 1/counts
            ],
            out_specs=pl.BlockSpec((tb, 1), lambda bi, si: (bi, 0)),
            scratch_shapes=[pltpu.VMEM((tb, 1, D), jnp.float32)],
        ),
        compiler_params=pltpu.CompilerParams(
            dimension_semantics=("parallel", "arbitrary"),
            vmem_limit_bytes=vmem_limit,
        ),
    )(token_embeddings, mask3, w32, inv_counts)

    # classifier bias + .view(-1) from the PyTorch module
    return out.reshape(-1) + b.reshape(-1).astype(jnp.float32)


def _reference_forward(token_embeddings, attention_mask, w, b):
    mask = attention_mask.astype(jnp.float32)[:, :, None]
    summed = jnp.sum(token_embeddings.astype(jnp.float32) * mask, axis=1)
    counts = jnp.maximum(jnp.sum(mask, axis=1), 1e-9)
    pooled = summed / counts
    return (pooled @ w.astype(jnp.float32).T + b).reshape(-1)


if __name__ == "__main__":
    key = jax.random.PRNGKey(0)
    k_emb, k_w, k_b, k_emb2, k_w2, k_b2 = jax.random.split(key, 6)

    # --- case 1: small shapes consistent with the module (batch=2, seq=8, hidden=32)
    B, S, D = 2, 8, 32
    # bf16-exact values so the MXU path matches the f32 reference tightly.
    token_embeddings = jax.random.normal(k_emb, (B, S, D), jnp.float32)
    token_embeddings = token_embeddings.astype(jnp.bfloat16).astype(jnp.float32)
    attention_mask = jnp.stack(
        [jnp.ones((S,), jnp.float32),
         jnp.concatenate([jnp.ones((S // 2,), jnp.float32),
                          jnp.zeros((S - S // 2,), jnp.float32)])],
        axis=0,
    )
    w = jax.random.normal(k_w, (1, D), jnp.float32) * 0.05
    b = jax.random.normal(k_b, (1,), jnp.float32) * 0.05

    logits = finetuning_wrapper_forward(token_embeddings, attention_mask, w, b)
    logits = jax.block_until_ready(logits)
    ref = _reference_forward(token_embeddings, attention_mask, w, b)
    assert logits.shape == (B,)
    assert jnp.allclose(logits, ref, atol=1e-4, rtol=1e-4)

    # --- case 2: tiled grid + S tail + megacore-friendly batch axis
    #             (grid = (2, 3), S = 300 not divisible by TS = 128)
    B2, S2, D2 = 16, 300, 128
    emb2 = jax.random.normal(k_emb2, (B2, S2, D2), jnp.float32)
    emb2 = emb2.astype(jnp.bfloat16).astype(jnp.float32)
    lens = (jnp.arange(B2) * 37 + 13) % S2 + 1
    mask2 = (jnp.arange(S2)[None, :] < lens[:, None]).astype(jnp.float32)
    w2 = jax.random.normal(k_w2, (1, D2), jnp.float32) * 0.05
    b2 = jax.random.normal(k_b2, (1,), jnp.float32) * 0.05

    logits2 = finetuning_wrapper_forward(emb2, mask2, w2, b2, tile_b=8, tile_s=128)
    logits2 = jax.block_until_ready(logits2)
    ref2 = _reference_forward(emb2, mask2, w2, b2)
    assert logits2.shape == (B2,)
    assert jnp.allclose(logits2, ref2, atol=1e-4, rtol=1e-4)

    print("KERNEL_OK")
</pallas_src>

<mosaic_0001>
module attributes {stable_mosaic.version = 11 : i64} {
  func.func @kernel(%arg0: i32, %arg1: i32, %arg2: memref<2x8x32xf32, #tpu.memory_space<vmem>>, %arg3: memref<2x1x8xf32, #tpu.memory_space<vmem>>, %arg4: memref<1x1x32xf32, #tpu.memory_space<vmem>>, %arg5: memref<2x1x1xf32, #tpu.memory_space<vmem>>, %arg6: memref<2x1xf32, #tpu.memory_space<vmem>>, %arg7: memref<2x1x32xf32, #tpu.memory_space<vmem>>) attributes {dimension_semantics = [#tpu.dimension_semantics<parallel>, #tpu.dimension_semantics<arbitrary>], iteration_bounds = array<i64: 1, 1>, scalar_prefetch = 0 : i64, scratch_operands = 1 : i64, tpu.core_type = #tpu.core_type<tc>, window_params = [{transform_indices = @transform_0, window_bounds = array<i64: 2, 8, 32>}, {transform_indices = @transform_1, window_bounds = array<i64: 2, 1, 8>}, {pipeline_mode = #tpu.pipeline_mode<synchronous>, transform_indices = @transform_2, window_bounds = array<i64: 1, 1, 32>}, {transform_indices = @transform_3, window_bounds = array<i64: 2, 1, 1>}, {transform_indices = @transform_4, window_bounds = array<i64: 2, 1>}]} {
    %c0_i32 = arith.constant 0 : i32
    %0 = arith.cmpi eq, %arg1, %c0_i32 : i32
    %1 = arith.extui %0 : i1 to i32
    %c0_i32_0 = arith.constant 0 : i32
    %2 = arith.cmpi ne, %1, %c0_i32_0 : i32
    scf.if %2 {
      %cst_14 = arith.constant 0.000000e+00 : f32
      %12 = vector.broadcast %cst_14 : f32 to vector<2x1x32xf32>
      %c0_15 = arith.constant 0 : index
      %c0_16 = arith.constant 0 : index
      %c0_17 = arith.constant 0 : index
      %13 = vector.load %arg7[%c0_15, %c0_16, %c0_17] : memref<2x1x32xf32, #tpu.memory_space<vmem>>, vector<2x1x32xf32>
      tpu.vector_store %arg7[%c0_15, %c0_16, %c0_17], %12 {strides = array<i32>} : memref<2x1x32xf32, #tpu.memory_space<vmem>>, vector<2x1x32xf32>,
    } else {
    }
    %c0 = arith.constant 0 : index
    %c0_1 = arith.constant 0 : index
    %c0_2 = arith.constant 0 : index
    %3 = vector.load %arg2[%c0, %c0_1, %c0_2] : memref<2x8x32xf32, #tpu.memory_space<vmem>>, vector<2x8x32xf32>
    %c0_3 = arith.constant 0 : index
    %c0_4 = arith.constant 0 : index
    %c0_5 = arith.constant 0 : index
    %4 = vector.load %arg3[%c0_3, %c0_4, %c0_5] : memref<2x1x8xf32, #tpu.memory_space<vmem>>, vector<2x1x8xf32>
    %c0_6 = arith.constant 0 : index
    %c0_7 = arith.constant 0 : index
    %c0_8 = arith.constant 0 : index
    %5 = vector.load %arg7[%c0_6, %c0_7, %c0_8] : memref<2x1x32xf32, #tpu.memory_space<vmem>>, vector<2x1x32xf32>
    "tpu.trace_start"() <{level = 10 : i32, message = "bqs,bsd->bqd"}> : () -> ()
    %cst = arith.constant dense<0.000000e+00> : vector<2x1x32xf32>
    %6 = tpu.matmul %4, %3, %cst {dimension_numbers = #tpu.dot_dimension_numbers<[2], [1], [1], [2], [0, 0, 0, 1, 1, 2], [0], [0]>} : vector<2x1x8xf32>, vector<2x8x32xf32>, vector<2x1x32xf32> -> vector<2x1x32xf32>
    "tpu.trace_stop"() : () -> ()
    %7 = arith.addf %5, %6 : vector<2x1x32xf32>
    %c0_9 = arith.constant 0 : index
    %c0_10 = arith.constant 0 : index
    %c0_11 = arith.constant 0 : index
    %8 = vector.load %arg7[%c0_9, %c0_10, %c0_11] : memref<2x1x32xf32, #tpu.memory_space<vmem>>, vector<2x1x32xf32>
    tpu.vector_store %arg7[%c0_9, %c0_10, %c0_11], %7 {strides = array<i32>} : memref<2x1x32xf32, #tpu.memory_space<vmem>>, vector<2x1x32xf32>,
    %c0_i32_12 = arith.constant 0 : i32
    %9 = arith.cmpi eq, %arg1, %c0_i32_12 : i32
    %10 = arith.extui %9 : i1 to i32
    %c0_i32_13 = arith.constant 0 : i32
    %11 = arith.cmpi ne, %10, %c0_i32_13 : i32
    scf.if %11 {
      %c0_14 = arith.constant 0 : index
      %c0_15 = arith.constant 0 : index
      %c0_16 = arith.constant 0 : index
      %12 = vector.load %arg7[%c0_14, %c0_15, %c0_16] : memref<2x1x32xf32, #tpu.memory_space<vmem>>, vector<2x1x32xf32>
      %c0_17 = arith.constant 0 : index
      %c0_18 = arith.constant 0 : index
      %c0_19 = arith.constant 0 : index
      %13 = vector.load %arg5[%c0_17, %c0_18, %c0_19] : memref<2x1x1xf32, #tpu.memory_space<vmem>>, vector<2x1x1xf32>
      %14 = vector.broadcast %13 : vector<2x1x1xf32> to vector<2x1x32xf32>
      %15 = arith.mulf %12, %14 : vector<2x1x32xf32>
      %c0_20 = arith.constant 0 : index
      %c0_21 = arith.constant 0 : index
      %c0_22 = arith.constant 0 : index
      %16 = vector.load %arg4[%c0_20, %c0_21, %c0_22] : memref<1x1x32xf32, #tpu.memory_space<vmem>>, vector<1x1x32xf32>
      %17 = vector.broadcast %16 : vector<1x1x32xf32> to vector<2x1x32xf32>
      %18 = arith.mulf %15, %17 : vector<2x1x32xf32>
      %cst_23 = arith.constant dense<0.000000e+00> : vector<2x1xf32>
      %19 = vector.multi_reduction <add>, %18, %cst_23 [2] : vector<2x1x32xf32> to vector<2x1xf32>
      %c0_24 = arith.constant 0 : index
      %c0_25 = arith.constant 0 : index
      %20 = vector.load %arg6[%c0_24, %c0_25] : memref<2x1xf32, #tpu.memory_space<vmem>>, vector<2x1xf32>
      tpu.vector_store %arg6[%c0_24, %c0_25], %19 {strides = array<i32>} : memref<2x1xf32, #tpu.memory_space<vmem>>, vector<2x1xf32>,
    } else {
    }
    return
  }
  func.func @transform_0(%arg0: i32, %arg1: i32) -> (i32, i32, i32) {
    %c0_i32 = arith.constant 0 : i32
    %c0_i32_0 = arith.constant 0 : i32
    return %arg0, %arg1, %c0_i32 : i32, i32, i32
  }
  func.func @transform_1(%arg0: i32, %arg1: i32) -> (i32, i32, i32) {
    %c0_i32 = arith.constant 0 : i32
    %c0_i32_0 = arith.constant 0 : i32
    return %arg0, %c0_i32, %arg1 : i32, i32, i32
  }
  func.func @transform_2(%arg0: i32, %arg1: i32) -> (i32, i32, i32) {
    %c0_i32 = arith.constant 0 : i32
    %c0_i32_0 = arith.constant 0 : i32
    %c0_i32_1 = arith.constant 0 : i32
    %c0_i32_2 = arith.constant 0 : i32
    return %c0_i32, %c0_i32_0, %c0_i32_1 : i32, i32, i32
  }
  func.func @transform_3(%arg0: i32, %arg1: i32) -> (i32, i32, i32) {
    %c0_i32 = arith.constant 0 : i32
    %c0_i32_0 = arith.constant 0 : i32
    %c0_i32_1 = arith.constant 0 : i32
    return %arg0, %c0_i32, %c0_i32_0 : i32, i32, i32
  }
  func.func @transform_4(%arg0: i32, %arg1: i32) -> (i32, i32) {
    %c0_i32 = arith.constant 0 : i32
    %c0_i32_0 = arith.constant 0 : i32
    return %arg0, %c0_i32 : i32, i32
  }
}

</mosaic_0001>

<bundles_post_ra>
// kernel: tpu_custom_call.1
= control target key start
LH: loop header
LB: loop body
LE: loop exit
PB: predicated region body
PF: predicated region fallthrough
CT: control target
= control target key end

     0   :  { %9 = vsyncpa [#allocation4], 0  ;;  %s175_s18 = smov [#allocation3]   ;;  %s176_s20 = smov 128   ;;  %s232_s0 = inlined_call_operand.hbm [shape: f32[2,8,32], index: 0, kind: input, shape index: {}]   ;;  %s233_s1 = inlined_call_operand.vmem [shape: f32[2,1,8], index: 1, kind: input, shape index: {}]   ;;  %s234_s2 = inlined_call_operand.vmem [shape: f32[1,1,32], index: 2, kind: input, shape index: {}]   ;;  %s235_s3 = inlined_call_operand.vmem [shape: f32[2,1,1], index: 3, kind: input, shape index: {}]   ;;  %s236_s4 = inlined_call_operand.vmem [shape: f32[2,1], index: 4, kind: output, shape index: {}]  }
   0x1   :  { %s14_s17 = sshll.u32 %s232_s0, 4  ;;  %s16_s19 = sshll.u32 %s175_s18, 4  ;;  %s15_s17 = int_to_ptr.hbm [resolvable:$true] %s14_s17  ;;  %s17_s19 = int_to_ptr.vmem [resolvable:$true] %s16_s19 }
   0x2   :  { %s177_s21 = smov 8  }
   0x3   :  { %22 = dma.hbm_to_vmem [thread:$0]  %s15_s17, 256, %s17_s19, [#allocation4], %s176_s20, %s176_s20, %s177_s21  }
   0x4   :  { %173 = dma.done.wait [#allocation4], 256  }
   0x5   :  { %174 = vsyncadd [#allocation4], 4294967040  ;;  %v178_v0 = vmov 0   ;;  %vm46_vm0 = vcmask 64512   ;;  %v40_v1 = vld [vmem:[#allocation3] sm:$0xff]  ;;  %v41_v2 = vld [vmem:[#allocation3 + $0x8] sm:$0xff] }
   0x6   :  { %148 = vset.pattern.permute.xlu0 %v178_v0  ;;  %v42_v3 = vld [vmem:[%s233_s1] sm:$0x1]  ;;  %65 = vmatpush.msra.mxu0 %v40_v1  ;;  %v43_v4 = vld [vmem:[%s233_s1 + $0x1] sm:$0x1]  ;;  %vm37_vm1 = vcmask 253952   ;;  %v179_v7 = vmov 0.0  }
   0x7   :  { %88 = vmatpush.msra.mxu1 %v41_v2  ;;  %v104_v5 = vld [vmem:[%s235_s3 + $0x1] sm:$0x1]  ;;  %141 = vmatmul.msk.f32.vlgmr.msra.gmra.mxu0 %vm46_vm0, %v42_v3  ;;  %v103_v6 = vld [vmem:[%s235_s3] sm:$0x1]  ;;  %38 = vst.msk [vmem:[#allocation2] sm:$0x1] %vm37_vm1, %v179_v7 }
   0x8   :  { %142 = vmatmul.msk.f32.vlgmr.msra.gmra.mxu1 %vm46_vm0, %v43_v4  ;;  %113 = vperm.xlu0 %148, %v104_v5   ;;  %39 = vst.msk [vmem:[#allocation2 + $0x1] sm:$0x1] %vm37_vm1, %v179_v7  ;;  %v119_v18 = vld [vmem:[%s234_s2] sm:$0x1]  ;;  %vm131_vm2 = vcmask 1041409   ;;  %vm134_vm3 = vcmask 1024  }
   0xe   :  { %v44_v8 = vld [vmem:[#allocation2] sm:$0x1] }
   0xf   :  { %v45_v9 = vld [vmem:[#allocation2 + $0x1] sm:$0x1] }
  0x10   :  { %107 = vperm.xlu0 %148, %v103_v6  }
  0x7a   :  { %v114_v10 = vpop.permute.xlu0 %113 }
  0x7b   :  { %v116_v15 = vperm.slane %v114_v10, 0 }
  0x82   :  { %v108_v16 = vpop.permute.xlu0 %107 }
  0x83   :  { %v110_v19 = vperm.slane %v108_v16, 0 }
  0x84   :  { %v67_v11 = vpop.f32.mrf.mxu0 }
  0x85   :  { %v90_v12 = vpop.f32.mrf.mxu1  ;;  %v93_v13 = vadd.f32 %v67_v11, %v44_v8 }
  0x86   :  { %v94_v14 = vadd.f32 %v90_v12, %v45_v9 }
  0x87   :  { %96 = vst.msk [vmem:[#allocation2] sm:$0x1] %vm37_vm1, %v93_v13 }
  0x88   :  { %97 = vst.msk [vmem:[#allocation2 + $0x1] sm:$0x1] %vm37_vm1, %v94_v14 }
  0x8e   :  { %v101_v21 = vld [vmem:[#allocation2] sm:$0x1] }
  0x8f   :  { %v102_v17 = vld [vmem:[#allocation2 + $0x1] sm:$0x1]  ;;  %v117_v23 = vmul.f32 %v110_v19, %v101_v21 }
  0x90   :  { %v118_v20 = vmul.f32 %v116_v15, %v102_v17 }
  0x91   :  { %v120_v25 = vmul.f32 %v119_v18, %v117_v23 }
  0x92   :  { %v121_v22 = vmul.f32 %v119_v18, %v118_v20 }
  0x93   :  { %v122_v26 = vsel %vm37_vm1, %v120_v25, 0.0 }
  0x94   :  { %v125_v24 = vsel %vm37_vm1, %v121_v22, 0.0 }
  0x95   :  { %126 = vadd.xlane.f32.xlu1 %v125_v24 }
  0x9d   :  { %123 = vadd.xlane.f32.xlu1 %v122_v26 }
 0x108   :  { %v127_v27 = vpop.xlane.xlu1 %126 }
 0x109   :  { %v130_v28 = vrot.slane %v127_v27, 7 }
 0x110   :  { %v124_v29 = vpop.xlane.xlu1 %123 }
 0x111   :  { %v132_v30 = vsel %vm131_vm2, %v130_v28, %v124_v29 }
 0x112   :  { %135 = vst.msk [vmem:[%s236_s4] sm:$0x3] %vm134_vm3, %v132_v30 }
 0x113   :  { %140 = vsyncpa [#allocation4], 1 }

</bundles_post_ra>
